<compile_context>
chip_gen: v6e
topology: v6e:2x2x1
jax: 0.10.0
libtpu: 0.0.40
codegen_flags: <defaults>
</compile_context>

<pallas_src>
import numpy as np
import jax
import jax.numpy as jnp
from jax.experimental import pallas as pl
from jax.experimental.pallas import tpu as pltpu


def _round_up(x, m):
    return -(-x // m) * m


# ----------------------------------------------------------------------------
# Deterministic parameter construction (librosa Slaney mel filterbank,
# periodic Hann window, real-DFT bases) — plain numpy glue.
# ----------------------------------------------------------------------------
def _hz_to_mel(f):
    f = np.asarray(f, dtype=np.float64)
    f_sp = 200.0 / 3.0
    mels = f / f_sp
    min_log_hz = 1000.0
    min_log_mel = min_log_hz / f_sp
    logstep = np.log(6.4) / 27.0
    return np.where(
        f >= min_log_hz,
        min_log_mel + np.log(np.maximum(f, 1e-10) / min_log_hz) / logstep,
        mels,
    )


def _mel_to_hz(m):
    m = np.asarray(m, dtype=np.float64)
    f_sp = 200.0 / 3.0
    freqs = f_sp * m
    min_log_hz = 1000.0
    min_log_mel = min_log_hz / f_sp
    logstep = np.log(6.4) / 27.0
    return np.where(
        m >= min_log_mel,
        min_log_hz * np.exp(logstep * (m - min_log_mel)),
        freqs,
    )


def mel_filterbank(sr, n_fft, n_mels, fmin, fmax):
    if fmax is None:
        fmax = sr / 2.0
    n_freqs = n_fft // 2 + 1
    fftfreqs = np.linspace(0.0, sr / 2.0, n_freqs)
    mel_pts = _mel_to_hz(np.linspace(_hz_to_mel(fmin), _hz_to_mel(fmax), n_mels + 2))
    fdiff = np.diff(mel_pts)
    ramps = mel_pts[:, None] - fftfreqs[None, :]
    weights = np.zeros((n_mels, n_freqs), dtype=np.float64)
    for i in range(n_mels):
        lower = -ramps[i] / fdiff[i]
        upper = ramps[i + 2] / fdiff[i + 1]
        weights[i] = np.maximum(0.0, np.minimum(lower, upper))
    enorm = 2.0 / (mel_pts[2 : n_mels + 2] - mel_pts[:n_mels])  # slaney norm
    weights *= enorm[:, None]
    return weights.astype(np.float32)


def windowed_rdft_bases(n_fft):
    """Real-DFT cos / (-sin) bases with the periodic Hann window folded in."""
    n = np.arange(n_fft, dtype=np.float64)
    win = 0.5 - 0.5 * np.cos(2.0 * np.pi * n / n_fft)   # torch.hann_window (periodic)
    n_freqs = n_fft // 2 + 1
    k = np.arange(n_freqs, dtype=np.float64)
    ang = 2.0 * np.pi * np.outer(n, k) / n_fft            # (n_fft, n_freqs)
    w_cos = (win[:, None] * np.cos(ang)).astype(np.float32)
    w_sin = (win[:, None] * (-np.sin(ang))).astype(np.float32)
    return w_cos, w_sin


# ----------------------------------------------------------------------------
# Pallas kernel: per-tile pred/target STFT matmul -> magnitude -> mel matmul ->
# log compression -> partial L1 sum, with independent sub-chains for MXU/EUP overlap.
# ----------------------------------------------------------------------------
def _mel_l1_kernel(fr_ref, w_ref, mel_ref, out_ref):
    tm = fr_ref.shape[1]
    f_pad = w_ref.shape[1] // 2

    def log_mel(frames_bf16):
        # frames_bf16: (rows, nfft) bf16
        stft = jnp.dot(frames_bf16, w_ref[...],
                       preferred_element_type=jnp.float32)        # (rows, 2*f_pad) f32
        re = stft[:, :f_pad]
        im = stft[:, f_pad:]
        mag = jnp.sqrt(re * re + im * im + 1e-9)                  # f32 (EUP)
        mel = jnp.dot(mag.astype(jnp.bfloat16), mel_ref[...],
                      preferred_element_type=jnp.float32)         # (rows, m_pad) f32
        return jnp.log(jnp.maximum(mel, 1e-5))                    # hifigan log compression

    # Split the tile into row sub-blocks x {pred, target}: independent
    # STFT(MXU) / sqrt+log(EUP) chains the LLO scheduler can overlap.
    n_sub = 2 if (tm >= 32 and tm % 32 == 0) else 1
    sub = tm // n_sub

    partial = jnp.float32(0.0)
    for k in range(n_sub):
        lo, hi = k * sub, (k + 1) * sub
        lp = log_mel(fr_ref[0, lo:hi, :])                         # pred chain
        lt = log_mel(fr_ref[1, lo:hi, :])                         # target chain
        # Padded frame rows / padded mel cols are identical in both -> diff == 0.
        partial = partial + jnp.sum(jnp.abs(lt - lp))

    row = jax.lax.broadcasted_iota(jnp.int32, (8, 128), 0)
    col = jax.lax.broadcasted_iota(jnp.int32, (8, 128), 1)
    out_ref[...] = jnp.where((row == 0) & (col == 0), partial, jnp.float32(0.0))


class MelSpectrogramLoss:
    """JAX/Pallas port of torch_jaekwon MelSpectrogramLoss (HiFi-GAN mel, L1 mean)."""

    def __init__(self, sampling_rate=44100, nfft=2048, hop_size=512,
                 mel_size=128, frequency_min=0, frequency_max=None):
        self.nfft = nfft
        self.hop = hop_size
        self.mel_size = mel_size

        n_freqs = nfft // 2 + 1
        mel = mel_filterbank(sampling_rate, nfft, mel_size,
                             frequency_min, frequency_max)        # (mel, n_freqs)

        # Trim frequency bins whose mel weight is identically zero (e.g. the Nyquist
        # bin for fmax=None, and everything above fmax). Exact: those STFT columns
        # never influence the mel projection.
        nz = np.nonzero(mel.sum(axis=0) > 0.0)[0]
        n_used = int(nz[-1]) + 1 if nz.size else 1

        f_pad = _round_up(n_used, 128)       # lane-aligned (trimmed) frequency axis
        m_pad = _round_up(mel_size, 128)     # lane-aligned mel axis
        self.f_pad = f_pad

        w_cos, w_sin = windowed_rdft_bases(nfft)                  # (nfft, n_freqs)
        wc = np.zeros((nfft, f_pad), np.float32); wc[:, :n_used] = w_cos[:, :n_used]
        ws = np.zeros((nfft, f_pad), np.float32); ws[:, :n_used] = w_sin[:, :n_used]
        mel_t = np.zeros((f_pad, m_pad), np.float32)
        mel_t[:n_used, :mel_size] = mel[:, :n_used].T             # padded rows/cols == 0

        # bf16 bases: MXU-native, half the resident VMEM / HBM bytes.
        self.w_basis = jnp.asarray(np.concatenate([wc, ws], axis=1),
                                   dtype=jnp.bfloat16)            # (nfft, 2*f_pad)
        self.mel_t = jnp.asarray(mel_t, dtype=jnp.bfloat16)       # (f_pad, m_pad)

    def _stacked_frames(self, pred, target):
        """(B, L) pred/target -> (2, B*T, nfft) bf16 frames (HiFi-GAN reflect pad)."""
        pad = (self.nfft - self.hop) // 2
        x = jnp.stack([pred, target], axis=0).astype(jnp.bfloat16)    # (2, B, L)
        x = jnp.pad(x, ((0, 0), (0, 0), (pad, pad)), mode="reflect")  # (2, B, Lp)
        _, b, lp = x.shape
        t = 1 + (lp - self.nfft) // self.hop
        if self.nfft % self.hop == 0:
            # Contiguous slice+reshape views instead of a gather.
            r = self.nfft // self.hop
            blocks = [
                x[:, :, s * self.hop: s * self.hop + t * self.hop]
                .reshape(2, b, t, self.hop)
                for s in range(r)
            ]
            frames = jnp.concatenate(blocks, axis=-1)                 # (2, B, T, nfft)
        else:
            idx = (self.hop * jnp.arange(t)[:, None]
                   + jnp.arange(self.nfft)[None, :])
            frames = x[:, :, idx]
        # TODO(synk): push framing fully into the kernel (DMA contiguous hop-blocks of
        # audio and accumulate hop-block matmuls) to avoid this nfft/hop x HBM expansion.
        return frames.reshape(2, b * t, self.nfft), b * t

    def __call__(self, pred, target):
        frames, m = self._stacked_frames(pred, target)            # (2, m, nfft) bf16

        # Row-tile selection:
        #  * cap TM so double-buffered inputs + f32 intermediates stay safely under
        #    v7x's 64 MiB/TC VMEM (scale down with nfft),
        #  * keep >= 2 grid steps when there is real work so the "parallel" axis can
        #    split across v7x TensorCores,
        #  * multiples of 16 (bf16 native (16,128) sublane packing).
        tm_max = 1024 if self.nfft <= 512 else (512 if self.nfft <= 1024 else 256)
        if m <= 256:
            tm = _round_up(m, 16)
        else:
            tm = min(tm_max, _round_up(-(-m // 2), 16))

        m_pad = _round_up(m, tm)
        if m_pad > m:
            frames = jnp.pad(frames, ((0, 0), (0, m_pad - m), (0, 0)))
        nblocks = m_pad // tm
        nfft = self.nfft

        out = pl.pallas_call(
            _mel_l1_kernel,
            out_shape=jax.ShapeDtypeStruct((nblocks * 8, 128), jnp.float32),
            grid=(nblocks,),
            in_specs=[
                pl.BlockSpec((2, tm, nfft), lambda i: (0, i, 0)),     # pred|target tile
                pl.BlockSpec(self.w_basis.shape, lambda i: (0, 0)),   # resident DFT basis
                pl.BlockSpec(self.mel_t.shape, lambda i: (0, 0)),     # resident mel basis
            ],
            out_specs=pl.BlockSpec((8, 128), lambda i: (i, 0)),       # per-block partials
            compiler_params=pltpu.CompilerParams(
                dimension_semantics=("parallel",),                    # megacore-safe
                vmem_limit_bytes=48 * 1024 * 1024,                    # safe on v7x 64 MiB/TC
            ),
        )(frames, self.w_basis, self.mel_t)

        # Normalize with the TRUE element count (B*T frames x mel_size bins).
        return jnp.sum(out) / jnp.float32(m * self.mel_size)


if __name__ == "__main__":
    key = jax.random.PRNGKey(0)
    k1, k2 = jax.random.split(key)
    B, L = 2, 1024
    pred = 0.1 * jax.random.normal(k1, (B, L), dtype=jnp.float32)
    target = pred + 0.01 * jax.random.normal(k2, (B, L), dtype=jnp.float32)

    loss_fn = MelSpectrogramLoss(sampling_rate=16000, nfft=256, hop_size=64,
                                 mel_size=128, frequency_min=0,
                                 frequency_max=None)
    loss = loss_fn(pred, target)
    jax.block_until_ready(loss)
    print("KERNEL_OK")
</pallas_src>

<mosaic_0001>
module attributes {stable_mosaic.version = 11 : i64} {
  func.func @_mel_l1_kernel(%arg0: i32, %arg1: memref<2x32x256xbf16, #tpu.memory_space<vmem>>, %arg2: memref<256x256xbf16, #tpu.memory_space<vmem>>, %arg3: memref<128x128xbf16, #tpu.memory_space<vmem>>, %arg4: memref<8x128xf32, #tpu.memory_space<vmem>>) attributes {dimension_semantics = [#tpu.dimension_semantics<parallel>], iteration_bounds = array<i64: 1>, scalar_prefetch = 0 : i64, scratch_operands = 0 : i64, tpu.core_type = #tpu.core_type<tc>, window_params = [{transform_indices = @transform_0, window_bounds = array<i64: 2, 32, 256>}, {pipeline_mode = #tpu.pipeline_mode<synchronous>, transform_indices = @transform_1, window_bounds = array<i64: 256, 256>}, {pipeline_mode = #tpu.pipeline_mode<synchronous>, transform_indices = @transform_2, window_bounds = array<i64: 128, 128>}, {transform_indices = @transform_3, window_bounds = array<i64: 8, 128>}]} {
    %c0 = arith.constant 0 : index
    %c0_0 = arith.constant 0 : index
    %c0_1 = arith.constant 0 : index
    %0 = vector.load %arg1[%c0, %c0_0, %c0_1] : memref<2x32x256xbf16, #tpu.memory_space<vmem>>, vector<1x16x256xbf16>
    %1 = vector.shape_cast %0 : vector<1x16x256xbf16> to vector<16x256xbf16>
    %c0_2 = arith.constant 0 : index
    %c0_3 = arith.constant 0 : index
    %2 = vector.load %arg2[%c0_2, %c0_3] : memref<256x256xbf16, #tpu.memory_space<vmem>>, vector<256x256xbf16>
    %cst = arith.constant dense<0.000000e+00> : vector<16x256xf32>
    %3 = tpu.matmul %1, %2, %cst {dimension_numbers = #tpu.dot_dimension_numbers<[1], [0], [0], [1], [0, 0, 1, 1], [], []>} : vector<16x256xbf16>, vector<256x256xbf16>, vector<16x256xf32> -> vector<16x256xf32>
    %4 = vector.extract_strided_slice %3 {offsets = [0, 0], sizes = [16, 128], strides = [1, 1]} : vector<16x256xf32> to vector<16x128xf32>
    %5 = vector.extract_strided_slice %3 {offsets = [0, 128], sizes = [16, 128], strides = [1, 1]} : vector<16x256xf32> to vector<16x128xf32>
    %6 = arith.mulf %4, %4 : vector<16x128xf32>
    %7 = arith.mulf %5, %5 : vector<16x128xf32>
    %8 = arith.addf %6, %7 : vector<16x128xf32>
    %cst_4 = arith.constant 9.99999971E-10 : f32
    %9 = vector.broadcast %cst_4 : f32 to vector<16x128xf32>
    %10 = arith.addf %8, %9 : vector<16x128xf32>
    %11 = math.sqrt %10 : vector<16x128xf32>
    %12 = arith.truncf %11 : vector<16x128xf32> to vector<16x128xbf16>
    %c0_5 = arith.constant 0 : index
    %c0_6 = arith.constant 0 : index
    %13 = vector.load %arg3[%c0_5, %c0_6] : memref<128x128xbf16, #tpu.memory_space<vmem>>, vector<128x128xbf16>
    %cst_7 = arith.constant dense<0.000000e+00> : vector<16x128xf32>
    %14 = tpu.matmul %12, %13, %cst_7 {dimension_numbers = #tpu.dot_dimension_numbers<[1], [0], [0], [1], [0, 0, 1, 1], [], []>} : vector<16x128xbf16>, vector<128x128xbf16>, vector<16x128xf32> -> vector<16x128xf32>
    %cst_8 = arith.constant 9.99999974E-6 : f32
    %15 = vector.broadcast %cst_8 : f32 to vector<16x128xf32>
    %16 = arith.maximumf %14, %15 : vector<16x128xf32>
    %17 = math.log %16 : vector<16x128xf32>
    %c1 = arith.constant 1 : index
    %c0_9 = arith.constant 0 : index
    %c0_10 = arith.constant 0 : index
    %18 = vector.load %arg1[%c1, %c0_9, %c0_10] : memref<2x32x256xbf16, #tpu.memory_space<vmem>>, vector<1x16x256xbf16>
    %19 = vector.shape_cast %18 : vector<1x16x256xbf16> to vector<16x256xbf16>
    %c0_11 = arith.constant 0 : index
    %c0_12 = arith.constant 0 : index
    %20 = vector.load %arg2[%c0_11, %c0_12] : memref<256x256xbf16, #tpu.memory_space<vmem>>, vector<256x256xbf16>
    %cst_13 = arith.constant dense<0.000000e+00> : vector<16x256xf32>
    %21 = tpu.matmul %19, %20, %cst_13 {dimension_numbers = #tpu.dot_dimension_numbers<[1], [0], [0], [1], [0, 0, 1, 1], [], []>} : vector<16x256xbf16>, vector<256x256xbf16>, vector<16x256xf32> -> vector<16x256xf32>
    %22 = vector.extract_strided_slice %21 {offsets = [0, 0], sizes = [16, 128], strides = [1, 1]} : vector<16x256xf32> to vector<16x128xf32>
    %23 = vector.extract_strided_slice %21 {offsets = [0, 128], sizes = [16, 128], strides = [1, 1]} : vector<16x256xf32> to vector<16x128xf32>
    %24 = arith.mulf %22, %22 : vector<16x128xf32>
    %25 = arith.mulf %23, %23 : vector<16x128xf32>
    %26 = arith.addf %24, %25 : vector<16x128xf32>
    %cst_14 = arith.constant 9.99999971E-10 : f32
    %27 = vector.broadcast %cst_14 : f32 to vector<16x128xf32>
    %28 = arith.addf %26, %27 : vector<16x128xf32>
    %29 = math.sqrt %28 : vector<16x128xf32>
    %30 = arith.truncf %29 : vector<16x128xf32> to vector<16x128xbf16>
    %c0_15 = arith.constant 0 : index
    %c0_16 = arith.constant 0 : index
    %31 = vector.load %arg3[%c0_15, %c0_16] : memref<128x128xbf16, #tpu.memory_space<vmem>>, vector<128x128xbf16>
    %cst_17 = arith.constant dense<0.000000e+00> : vector<16x128xf32>
    %32 = tpu.matmul %30, %31, %cst_17 {dimension_numbers = #tpu.dot_dimension_numbers<[1], [0], [0], [1], [0, 0, 1, 1], [], []>} : vector<16x128xbf16>, vector<128x128xbf16>, vector<16x128xf32> -> vector<16x128xf32>
    %cst_18 = arith.constant 9.99999974E-6 : f32
    %33 = vector.broadcast %cst_18 : f32 to vector<16x128xf32>
    %34 = arith.maximumf %32, %33 : vector<16x128xf32>
    %35 = math.log %34 : vector<16x128xf32>
    %36 = arith.subf %35, %17 : vector<16x128xf32>
    %37 = math.absf %36 : vector<16x128xf32>
    %38 = vector.shape_cast %37 : vector<16x128xf32> to vector<1x16x128xf32>
    %cst_19 = arith.constant dense<0.000000e+00> : vector<1xf32>
    %39 = vector.multi_reduction <add>, %38, %cst_19 [1, 2] : vector<1x16x128xf32> to vector<1xf32>
    %40 = vector.shape_cast %39 : vector<1xf32> to vector<1x1x1xf32>
    %41 = vector.extract %40[0, 0, 0] : f32 from vector<1x1x1xf32>
    %cst_20 = arith.constant 0.000000e+00 : f32
    %42 = arith.addf %cst_20, %41 : f32
    %c0_21 = arith.constant 0 : index
    %c16 = arith.constant 16 : index
    %c0_22 = arith.constant 0 : index
    %43 = vector.load %arg1[%c0_21, %c16, %c0_22] : memref<2x32x256xbf16, #tpu.memory_space<vmem>>, vector<1x16x256xbf16>
    %44 = vector.shape_cast %43 : vector<1x16x256xbf16> to vector<16x256xbf16>
    %c0_23 = arith.constant 0 : index
    %c0_24 = arith.constant 0 : index
    %45 = vector.load %arg2[%c0_23, %c0_24] : memref<256x256xbf16, #tpu.memory_space<vmem>>, vector<256x256xbf16>
    %cst_25 = arith.constant dense<0.000000e+00> : vector<16x256xf32>
    %46 = tpu.matmul %44, %45, %cst_25 {dimension_numbers = #tpu.dot_dimension_numbers<[1], [0], [0], [1], [0, 0, 1, 1], [], []>} : vector<16x256xbf16>, vector<256x256xbf16>, vector<16x256xf32> -> vector<16x256xf32>
    %47 = vector.extract_strided_slice %46 {offsets = [0, 0], sizes = [16, 128], strides = [1, 1]} : vector<16x256xf32> to vector<16x128xf32>
    %48 = vector.extract_strided_slice %46 {offsets = [0, 128], sizes = [16, 128], strides = [1, 1]} : vector<16x256xf32> to vector<16x128xf32>
    %49 = arith.mulf %47, %47 : vector<16x128xf32>
    %50 = arith.mulf %48, %48 : vector<16x128xf32>
    %51 = arith.addf %49, %50 : vector<16x128xf32>
    %cst_26 = arith.constant 9.99999971E-10 : f32
    %52 = vector.broadcast %cst_26 : f32 to vector<16x128xf32>
    %53 = arith.addf %51, %52 : vector<16x128xf32>
    %54 = math.sqrt %53 : vector<16x128xf32>
    %55 = arith.truncf %54 : vector<16x128xf32> to vector<16x128xbf16>
    %c0_27 = arith.constant 0 : index
    %c0_28 = arith.constant 0 : index
    %56 = vector.load %arg3[%c0_27, %c0_28] : memref<128x128xbf16, #tpu.memory_space<vmem>>, vector<128x128xbf16>
    %cst_29 = arith.constant dense<0.000000e+00> : vector<16x128xf32>
    %57 = tpu.matmul %55, %56, %cst_29 {dimension_numbers = #tpu.dot_dimension_numbers<[1], [0], [0], [1], [0, 0, 1, 1], [], []>} : vector<16x128xbf16>, vector<128x128xbf16>, vector<16x128xf32> -> vector<16x128xf32>
    %cst_30 = arith.constant 9.99999974E-6 : f32
    %58 = vector.broadcast %cst_30 : f32 to vector<16x128xf32>
    %59 = arith.maximumf %57, %58 : vector<16x128xf32>
    %60 = math.log %59 : vector<16x128xf32>
    %c1_31 = arith.constant 1 : index
    %c16_32 = arith.constant 16 : index
    %c0_33 = arith.constant 0 : index
    %61 = vector.load %arg1[%c1_31, %c16_32, %c0_33] : memref<2x32x256xbf16, #tpu.memory_space<vmem>>, vector<1x16x256xbf16>
    %62 = vector.shape_cast %61 : vector<1x16x256xbf16> to vector<16x256xbf16>
    %c0_34 = arith.constant 0 : index
    %c0_35 = arith.constant 0 : index
    %63 = vector.load %arg2[%c0_34, %c0_35] : memref<256x256xbf16, #tpu.memory_space<vmem>>, vector<256x256xbf16>
    %cst_36 = arith.constant dense<0.000000e+00> : vector<16x256xf32>
    %64 = tpu.matmul %62, %63, %cst_36 {dimension_numbers = #tpu.dot_dimension_numbers<[1], [0], [0], [1], [0, 0, 1, 1], [], []>} : vector<16x256xbf16>, vector<256x256xbf16>, vector<16x256xf32> -> vector<16x256xf32>
    %65 = vector.extract_strided_slice %64 {offsets = [0, 0], sizes = [16, 128], strides = [1, 1]} : vector<16x256xf32> to vector<16x128xf32>
    %66 = vector.extract_strided_slice %64 {offsets = [0, 128], sizes = [16, 128], strides = [1, 1]} : vector<16x256xf32> to vector<16x128xf32>
    %67 = arith.mulf %65, %65 : vector<16x128xf32>
    %68 = arith.mulf %66, %66 : vector<16x128xf32>
    %69 = arith.addf %67, %68 : vector<16x128xf32>
    %cst_37 = arith.constant 9.99999971E-10 : f32
    %70 = vector.broadcast %cst_37 : f32 to vector<16x128xf32>
    %71 = arith.addf %69, %70 : vector<16x128xf32>
    %72 = math.sqrt %71 : vector<16x128xf32>
    %73 = arith.truncf %72 : vector<16x128xf32> to vector<16x128xbf16>
    %c0_38 = arith.constant 0 : index
    %c0_39 = arith.constant 0 : index
    %74 = vector.load %arg3[%c0_38, %c0_39] : memref<128x128xbf16, #tpu.memory_space<vmem>>, vector<128x128xbf16>
    %cst_40 = arith.constant dense<0.000000e+00> : vector<16x128xf32>
    %75 = tpu.matmul %73, %74, %cst_40 {dimension_numbers = #tpu.dot_dimension_numbers<[1], [0], [0], [1], [0, 0, 1, 1], [], []>} : vector<16x128xbf16>, vector<128x128xbf16>, vector<16x128xf32> -> vector<16x128xf32>
    %cst_41 = arith.constant 9.99999974E-6 : f32
    %76 = vector.broadcast %cst_41 : f32 to vector<16x128xf32>
    %77 = arith.maximumf %75, %76 : vector<16x128xf32>
    %78 = math.log %77 : vector<16x128xf32>
    %79 = arith.subf %78, %60 : vector<16x128xf32>
    %80 = math.absf %79 : vector<16x128xf32>
    %81 = vector.shape_cast %80 : vector<16x128xf32> to vector<1x16x128xf32>
    %cst_42 = arith.constant dense<0.000000e+00> : vector<1xf32>
    %82 = vector.multi_reduction <add>, %81, %cst_42 [1, 2] : vector<1x16x128xf32> to vector<1xf32>
    %83 = vector.shape_cast %82 : vector<1xf32> to vector<1x1x1xf32>
    %84 = vector.extract %83[0, 0, 0] : f32 from vector<1x1x1xf32>
    %85 = arith.addf %42, %84 : f32
    %86 = tpu.iota {dimensions = array<i32: 0>} : vector<8x128xi32>
    %87 = tpu.iota {dimensions = array<i32: 1>} : vector<8x128xi32>
    %c0_i32 = arith.constant 0 : i32
    %88 = vector.broadcast %c0_i32 : i32 to vector<8x128xi32>
    %89 = arith.cmpi eq, %86, %88 : vector<8x128xi32>
    %c0_i32_43 = arith.constant 0 : i32
    %90 = vector.broadcast %c0_i32_43 : i32 to vector<8x128xi32>
    %91 = arith.cmpi eq, %87, %90 : vector<8x128xi32>
    %92 = arith.andi %89, %91 : vector<8x128xi1>
    %cst_44 = arith.constant 0.000000e+00 : f32
    %93 = vector.broadcast %85 : f32 to vector<8x128xf32>
    %94 = vector.broadcast %cst_44 : f32 to vector<8x128xf32>
    %95 = arith.select %92, %93, %94 : vector<8x128xi1>, vector<8x128xf32>
    %c0_45 = arith.constant 0 : index
    %c0_46 = arith.constant 0 : index
    %96 = vector.load %arg4[%c0_45, %c0_46] : memref<8x128xf32, #tpu.memory_space<vmem>>, vector<8x128xf32>
    tpu.vector_store %arg4[%c0_45, %c0_46], %95 {strides = array<i32>} : memref<8x128xf32, #tpu.memory_space<vmem>>, vector<8x128xf32>,
    return
  }
  func.func @transform_0(%arg0: i32) -> (i32, i32, i32) {
    %c0_i32 = arith.constant 0 : i32
    %c0_i32_0 = arith.constant 0 : i32
    %c0_i32_1 = arith.constant 0 : i32
    return %c0_i32, %arg0, %c0_i32_0 : i32, i32, i32
  }
  func.func @transform_1(%arg0: i32) -> (i32, i32) {
    %c0_i32 = arith.constant 0 : i32
    %c0_i32_0 = arith.constant 0 : i32
    %c0_i32_1 = arith.constant 0 : i32
    return %c0_i32, %c0_i32_0 : i32, i32
  }
  func.func @transform_2(%arg0: i32) -> (i32, i32) {
    %c0_i32 = arith.constant 0 : i32
    %c0_i32_0 = arith.constant 0 : i32
    %c0_i32_1 = arith.constant 0 : i32
    return %c0_i32, %c0_i32_0 : i32, i32
  }
  func.func @transform_3(%arg0: i32) -> (i32, i32) {
    %c0_i32 = arith.constant 0 : i32
    %c0_i32_0 = arith.constant 0 : i32
    return %arg0, %c0_i32 : i32, i32
  }
}

</mosaic_0001>

<bundles_post_ra>
// kernel: tpu_custom_call.1
= control target key start
LH: loop header
LB: loop body
LE: loop exit
PB: predicated region body
PF: predicated region fallthrough
CT: control target
= control target key end

     0   :  { %8 = vsyncpa [#allocation3], 0  ;;  %s1562_s0 = inlined_call_operand.hbm [shape: bf16[2,32,256], index: 0, kind: input, shape index: {}]   ;;  %s1563_s1 = inlined_call_operand.hbm [shape: bf16[256,256], index: 1, kind: input, shape index: {}]   ;;  %s1564_s2 = inlined_call_operand.hbm [shape: bf16[128,128], index: 2, kind: input, shape index: {}]   ;;  %s1565_s3 = inlined_call_operand.hbm [shape: f32[8,128], index: 3, kind: output, shape index: {}]  }
   0x1   :  { %9 = vsyncpa [#allocation6], 0 }
   0x2   :  { %10 = vsyncpa [#allocation4], 0  ;;  %s1234_s12 = smov [#allocation5]   ;;  %s1235_s14 = smov [#allocation2]  }
   0x3   :  { %s28_s13 = sshll.u32 %s1234_s12, 4  ;;  %s16_s15 = sshll.u32 %s1235_s14, 4  ;;  %s29_s13 = int_to_ptr.vmem [resolvable:$true] %s28_s13  ;;  %s17_s15 = int_to_ptr.vmem [resolvable:$true] %s16_s15 }
   0x4   :  { %s1156_s16 = scalar_lea.vmem %s29_s13, 4096  ;;  %p1161_p1 = scmp.lt.s32.totalorder %s29_s13, %s29_s13 }
   0x5   :  { %p1157_p0 = scmp.ne.s32.totalorder %s29_s13, %s1156_s16  ;;  %p1162_p2 = scmp.lt.s32.totalorder %s1156_s16, %s1156_s16 }
   0x7   :  { %p1163_p3 = por %p1162_p2, %p1161_p1 }
   0x9   :  { %p1164_p4 = pnand %p1163_p3, %p1157_p0 }
   0xb   :  { %1167 = shalt.err (!%p1164_p4)
}
   0xc   :  { %s1236_s17 = smov 128   ;;  %s1237_s18 = smov 8  }
   0xd   :  { %34 = dma.hbm_to_vmem [thread:$0]  %s1563_s1, 4096, %s29_s13, [#allocation6], %s1236_s17, %s1236_s17, %s1237_s18  }
   0xe   :  { %s1176_s21 = scalar_lea.vmem %s17_s15, 1024  ;;  %p1181_p6 = scmp.lt.s32.totalorder %s17_s15, %s17_s15 }
   0xf   :  { %p1177_p5 = scmp.ne.s32.totalorder %s17_s15, %s1176_s21  ;;  %p1182_p7 = scmp.lt.s32.totalorder %s1176_s21, %s1176_s21 }
  0x11   :  { %p1183_p8 = por %p1182_p7, %p1181_p6 }
  0x13   :  { %p1184_p9 = pnand %p1183_p8, %p1177_p5 }
  0x15   :  { %1187 = shalt.err (!%p1184_p9)
}
  0x16   :  { %22 = dma.hbm_to_vmem [thread:$0]  %s1562_s0, 1024, %s17_s15, [#allocation3], %s1236_s17, %s1236_s17, %s1237_s18  }
  0x17   :  { %s1238_s24 = smov [#allocation7]  }
  0x18   :  { %s40_s25 = sshll.u32 %s1238_s24, 4  ;;  %s41_s25 = int_to_ptr.vmem [resolvable:$true] %s40_s25 }
  0x19   :  { %s1196_s26 = scalar_lea.vmem %s41_s25, 1024  ;;  %p1201_p11 = scmp.lt.s32.totalorder %s41_s25, %s41_s25 }
  0x1a   :  { %p1197_p10 = scmp.ne.s32.totalorder %s41_s25, %s1196_s26  ;;  %p1202_p12 = scmp.lt.s32.totalorder %s1196_s26, %s1196_s26 }
  0x1c   :  { %p1203_p13 = por %p1202_p12, %p1201_p11 }
  0x1e   :  { %p1204_p0 = pnand %p1203_p13, %p1197_p10 }
  0x20   :  { %1207 = shalt.err (!%p1204_p0)
}
  0x21   :  { %s1239_s1 = smov 64   ;;  %s1240_s27 = smov 4  }
  0x22   :  { %46 = dma.hbm_to_vmem [thread:$0]  %s1564_s2, 1024, %s41_s25, [#allocation6], %s1239_s1, %s1239_s1, %s1240_s27  }
  0x23   :  { %1228 = dma.done.wait [#allocation3], 1024  }
  0x24   :  { %1229 = vsyncadd [#allocation3], 4294966272 }
  0x25   :  { %1230 = dma.done.wait [#allocation6], 5120  }
  0x26   :  { %1231 = vsyncadd [#allocation6], 4294962176  ;;  %v1273_v0 = vld [vmem:[#allocation5 + $0x74] ss:$8 sps:$4 sm:$0xff]   ;;  %v1275_v1 = vld [vmem:[#allocation5 + $0x70] ss:$8 sps:$4 sm:$0xff]  }
  0x27   :  { %261 = vmatprep.subr.bf16.mxu0 %v1273_v0  ;;  %v1278_v2 = vld [vmem:[#allocation5 + $0x64] ss:$8 sps:$4 sm:$0xff]   ;;  %v1281_v3 = vld [vmem:[#allocation5 + $0x60] ss:$8 sps:$4 sm:$0xff]   ;;  %v1284_v4 = vld [vmem:[#allocation5 + $0x54] ss:$8 sps:$4 sm:$0xff]  }
  0x28   :  { %262 = vmatpush1.bf16.msra.mxu0 %v1275_v1  ;;  %v1287_v5 = vld [vmem:[#allocation5 + $0x50] ss:$8 sps:$4 sm:$0xff]   ;;  %v1290_v6 = vld [vmem:[#allocation5 + $0x44] ss:$8 sps:$4 sm:$0xff]   ;;  %v1293_v7 = vld [vmem:[#allocation5 + $0x40] ss:$8 sps:$4 sm:$0xff]  }
  0x29   :  { %263 = vmatprep.subr.bf16.mxu0 %v1278_v2  ;;  %v1296_v8 = vld [vmem:[#allocation5 + $0x34] ss:$8 sps:$4 sm:$0xff]   ;;  %v1299_v9 = vld [vmem:[#allocation5 + $0x30] ss:$8 sps:$4 sm:$0xff]   ;;  %v1302_v10 = vld [vmem:[#allocation5 + $0x24] ss:$8 sps:$4 sm:$0xff]  }
  0x2a   :  { %v1305_v11 = vld [vmem:[#allocation5 + $0x20] ss:$8 sps:$4 sm:$0xff]   ;;  %v1308_v12 = vld [vmem:[#allocation5 + $0x14] ss:$8 sps:$4 sm:$0xff]   ;;  %v1310_v13 = vld [vmem:[#allocation5 + $0x10] ss:$8 sps:$4 sm:$0xff]  }
  0x2b   :  { %v1312_v14 = vld [vmem:[#allocation5 + $0x4] ss:$8 sps:$4 sm:$0xff]   ;;  %v1316_v16 = vld [vmem:[#allocation5] ss:$8 sps:$4 sm:$0xff]   ;;  %v1318_v17 = vld [vmem:[#allocation5 + $0xf4] ss:$8 sps:$4 sm:$0xff]  }
  0x2c   :  { %264 = vmatpush1.bf16.msra.mxu0 %v1281_v3  ;;  %v1098_v15 = vld [vmem:[#allocation2 + $0x4] ss:$8 sps:$4 sm:$0xff]   ;;  %v1323_v18 = vld [vmem:[#allocation5 + $0xf0] ss:$8 sps:$4 sm:$0xff]   ;;  %v1329_v20 = vld [vmem:[#allocation5 + $0xe0] ss:$8 sps:$4 sm:$0xff]  }
  0x2d   :  { %265 = vmatprep.subr.bf16.mxu0 %v1284_v4  ;;  %293 = vmatprep.mubr.bf16.mxu0 %v1098_v15  ;;  %v1326_v19 = vld [vmem:[#allocation5 + $0xe4] ss:$8 sps:$4 sm:$0xff]   ;;  %v1332_v21 = vld [vmem:[#allocation5 + $0xd4] ss:$8 sps:$4 sm:$0xff]   ;;  %v1335_v22 = vld [vmem:[#allocation5 + $0xd0] ss:$8 sps:$4 sm:$0xff]  }
  0x2e   :  { %v1338_v23 = vld [vmem:[#allocation5 + $0xc4] ss:$8 sps:$4 sm:$0xff]   ;;  %v1341_v24 = vld [vmem:[#allocation5 + $0xc0] ss:$8 sps:$4 sm:$0xff]   ;;  %v1344_v25 = vld [vmem:[#allocation5 + $0xb4] ss:$8 sps:$4 sm:$0xff]  }
  0x2f   :  { %v1347_v26 = vld [vmem:[#allocation5 + $0xb0] ss:$8 sps:$4 sm:$0xff]   ;;  %v1350_v27 = vld [vmem:[#allocation5 + $0xa4] ss:$8 sps:$4 sm:$0xff]   ;;  %v1353_v28 = vld [vmem:[#allocation5 + $0xa0] ss:$8 sps:$4 sm:$0xff]  }
  0x30   :  { %266 = vmatpush1.bf16.msra.mxu0 %v1287_v5  ;;  %v1356_v29 = vld [vmem:[#allocation5 + $0x94] ss:$8 sps:$4 sm:$0xff]   ;;  %v1359_v30 = vld [vmem:[#allocation5 + $0x90] ss:$8 sps:$4 sm:$0xff]   ;;  %v1362_v31 = vld [vmem:[#allocation5 + $0x84] ss:$8 sps:$4 sm:$0xff]  }
  0x31   :  { %267 = vmatprep.subr.bf16.mxu0 %v1290_v6  ;;  %v1365_v32 = vld [vmem:[#allocation5 + $0x80] ss:$8 sps:$4 sm:$0xff]   ;;  %v1369_v34 = vld [vmem:[#allocation7 + $0x38] sm:$0xff]   ;;  %v1241_v35 = vmov 0.0   ;;  %v1377_v36 = vld [vmem:[#allocation7 + $0x30] sm:$0xff]   ;;  %vm1242_vm0 = vmmov 0  }
  0x32   :  { %v1096_v33 = vld [vmem:[#allocation2] ss:$8 sps:$4 sm:$0xff]   ;;  %954 = vmatprep.subr.bf16.mxu1 %v1241_v35  ;;  %v1392_v39 = vld [vmem:[#allocation7 + $0x18] sm:$0xff]   ;;  %970 = vmatprep.mubr.msk.bf16.mxu1 %vm1242_vm0, %v1241_v35  ;;  %v1402_v40 = vld [vmem:[#allocation7 + $0x10] sm:$0xff]   ;;  %s1243_s30 = smov [#allocation8]  }
  0x33   :  { %955 = vmatpush3.bf16.msra.mxu1 %v1369_v34  ;;  %v1383_v37 = vld [vmem:[#allocation7 + $0x28] sm:$0xff]   ;;  %v1389_v38 = vld [vmem:[#allocation7 + $0x20] sm:$0xff]   ;;  %s860_s4 = sshll.u32 %s1243_s30, 4  ;;  %s861_s4 = int_to_ptr.vmem [resolvable:$true] %s860_s4 }
  0x34   :  { %268 = vmatpush1.bf16.msra.mxu0 %v1293_v7  ;;  %956 = vmatprep.subr.bf16.mxu1 %v1241_v35  ;;  %v1408_v41 = vld [vmem:[#allocation7 + $0x8] sm:$0xff]   ;;  %v1414_v42 = vld [vmem:[#allocation7] sm:$0xff]   ;;  %s1208_s6 = scalar_lea.vmem %s861_s4, 128  ;;  %p1213_p2 = scmp.lt.s32.totalorder %s861_s4, %s861_s4 }
  0x35   :  { %269 = vmatprep.subr.bf16.mxu0 %v1296_v8  ;;  %p1209_p1 = scmp.ne.s32.totalorder %s861_s4, %s1208_s6  ;;  %p1214_p3 = scmp.lt.s32.totalorder %s1208_s6, %s1208_s6 }
  0x37   :  { %957 = vmatpush3.bf16.msra.mxu1 %v1377_v36  ;;  %p1215_p4 = por %p1214_p3, %p1213_p2 }
  0x38   :  { %270 = vmatpush1.bf16.msra.mxu0 %v1299_v9  ;;  %958 = vmatprep.subr.bf16.mxu1 %v1241_v35 }
  0x39   :  { %271 = vmatprep.subr.bf16.mxu0 %v1302_v10  ;;  %p1216_p5 = pnand %p1215_p4, %p1209_p1 }
  0x3b   :  { %959 = vmatpush3.bf16.msra.mxu1 %v1383_v37 }
  0x3c   :  { %272 = vmatpush1.bf16.msra.mxu0 %v1305_v11  ;;  %960 = vmatprep.subr.bf16.mxu1 %v1241_v35 }
  0x3d   :  { %273 = vmatprep.subr.bf16.mxu0 %v1308_v12 }
  0x3f   :  { %961 = vmatpush3.bf16.msra.mxu1 %v1389_v38 }
  0x40   :  { %274 = vmatpush1.bf16.msra.mxu0 %v1310_v13  ;;  %962 = vmatprep.subr.bf16.mxu1 %v1241_v35 }
  0x41   :  { %275 = vmatprep.subr.bf16.mxu0 %v1312_v14 }
  0x43   :  { %963 = vmatpush3.bf16.msra.mxu1 %v1392_v39 }
  0x44   :  { %276 = vmatpush1.bf16.msra.mxu0 %v1316_v16  ;;  %964 = vmatprep.subr.bf16.mxu1 %v1241_v35 }
  0x45   :  { %277 = vmatprep.subr.bf16.mxu0 %v1318_v17 }
  0x47   :  { %965 = vmatpush3.bf16.msra.mxu1 %v1402_v40 }
  0x48   :  { %278 = vmatpush2.bf16.msra.mxu0 %v1323_v18  ;;  %966 = vmatprep.subr.bf16.mxu1 %v1241_v35 }
  0x49   :  { %279 = vmatprep.subr.bf16.mxu0 %v1326_v19 }
  0x4b   :  { %967 = vmatpush3.bf16.msra.mxu1 %v1408_v41 }
  0x4c   :  { %280 = vmatpush2.bf16.msra.mxu0 %v1329_v20  ;;  %968 = vmatprep.subr.bf16.mxu1 %v1241_v35 }
  0x4d   :  { %281 = vmatprep.subr.bf16.mxu0 %v1332_v21 }
  0x4f   :  { %969 = vmatpush3.bf16.msra.mxu1 %v1414_v42 }
  0x50   :  { %282 = vmatpush2.bf16.msra.mxu0 %v1335_v22  ;;  %451 = vmatprep.subr.bf16.mxu1 %v1273_v0 }
  0x51   :  { %283 = vmatprep.subr.bf16.mxu0 %v1338_v23 }
  0x54   :  { %284 = vmatpush2.bf16.msra.mxu0 %v1341_v24 }
  0x55   :  { %285 = vmatprep.subr.bf16.mxu0 %v1344_v25 }
  0x58   :  { %286 = vmatpush2.bf16.msra.mxu0 %v1347_v26 }
  0x59   :  { %287 = vmatprep.subr.bf16.mxu0 %v1350_v27 }
  0x5c   :  { %288 = vmatpush2.bf16.msra.mxu0 %v1353_v28 }
  0x5d   :  { %289 = vmatprep.subr.bf16.mxu0 %v1356_v29 }
  0x60   :  { %290 = vmatpush2.bf16.msra.mxu0 %v1359_v30 }
  0x61   :  { %291 = vmatprep.subr.bf16.mxu0 %v1362_v31 }
  0x64   :  { %292 = vmatpush2.bf16.msra.mxu0 %v1365_v32 }
  0x65   :  { %974 = vmatprep.subr.bf16.mxu0 %v1241_v35 }
  0x67   :  { %294 = vmatmul.mubr.bf16.vlgmr.msra.gmra.mxu0 %v1096_v33  ;;  %v1109_v33 = vld [vmem:[#allocation2 + $0x24] ss:$8 sps:$4 sm:$0xff]  }
  0x68   :  { %975 = vmatpush3.bf16.msra.mxu0 %v1369_v34  ;;  %990 = vmatprep.mubr.msk.bf16.mxu0 %vm1242_vm0, %v1241_v35 }
  0x69   :  { %976 = vmatprep.subr.bf16.mxu0 %v1241_v35 }
  0x6c   :  { %977 = vmatpush3.bf16.msra.mxu0 %v1377_v36 }
  0x6d   :  { %978 = vmatprep.subr.bf16.mxu0 %v1241_v35 }
  0x70   :  { %979 = vmatpush3.bf16.msra.mxu0 %v1383_v37 }
  0x71   :  { %980 = vmatprep.subr.bf16.mxu0 %v1241_v35 }
  0x74   :  { %981 = vmatpush3.bf16.msra.mxu0 %v1389_v38 }
  0x75   :  { %982 = vmatprep.subr.bf16.mxu0 %v1241_v35 }
  0x78   :  { %983 = vmatpush3.bf16.msra.mxu0 %v1392_v39 }
  0x79   :  { %984 = vmatprep.subr.bf16.mxu0 %v1241_v35 }
  0x7c   :  { %985 = vmatpush3.bf16.msra.mxu0 %v1402_v40 }
  0x7d   :  { %986 = vmatprep.subr.bf16.mxu0 %v1241_v35 }
  0x80   :  { %987 = vmatpush3.bf16.msra.mxu0 %v1408_v41 }
  0x81   :  { %988 = vmatprep.subr.bf16.mxu0 %v1241_v35 }
  0x84   :  { %989 = vmatpush3.bf16.msra.mxu0 %v1414_v42 }
  0x85   :  { %591 = vmatprep.subr.bf16.mxu0 %v1273_v0 }
 0x127   :  { %v295_v43 = vpop.f32.mrf.mxu0 }
 0x128   :  { %v304_v45 = vmul.f32 %v295_v43, %v295_v43 }
 0x129   :  { %v297_v44 = vpop.f32.mrf.mxu0 }
 0x12a   :  { %v306_v46 = vmul.f32 %v297_v44, %v297_v44  ;;  %v1107_v44 = vld [vmem:[#allocation2 + $0x20] ss:$8 sps:$4 sm:$0xff]  }
 0x12b   :  { %v299_v47 = vpop.f32.mrf.mxu0 }
 0x12c   :  { %v308_v48 = vadd.f32 %v306_v46, %v304_v45  ;;  %v305_v51 = vmul.f32 %v299_v47, %v299_v47 }
 0x12d   :  { %v301_v49 = vpop.f32.mrf.mxu0 }
 0x12e   :  { %v310_v50 = vadd.f32 1e-09, %v308_v48  ;;  %v307_v52 = vmul.f32 %v301_v49, %v301_v49 }
 0x130   :  { %1116 = vrsqrt.f32 %v310_v50  ;;  %v309_v53 = vadd.f32 %v307_v52, %v305_v51  ;;  %vm314_vm1 = vcmp.eq.f32.partialorder %v310_v50, inf  ;;  %v317_v60 = vand.u32 2147483648, %v310_v50 }
 0x131   :  { %vm316_vm3 = vcmp.eq.f32.partialorder %v310_v50, 0.0 }
 0x132   :  { %v311_v54 = vadd.f32 1e-09, %v309_v53 }
 0x134   :  { %1118 = vrsqrt.f32 %v311_v54  ;;  %vm321_vm2 = vcmp.eq.f32.partialorder %v311_v54, inf  ;;  %v324_v61 = vand.u32 2147483648, %v311_v54  ;;  %vm323_vm4 = vcmp.eq.f32.partialorder %v311_v54, 0.0 }
 0x13d   :  { %v1117_v55 = vpop.eup %1116 }
 0x13e   :  { %v313_v56 = vmul.f32 %v1117_v55, %v310_v50 }
 0x140   :  { %v315_v58 = vsel %vm314_vm1, %v310_v50, %v313_v56 }
 0x141   :  { %v1119_v57 = vpop.eup %1118  ;;  %v318_v63 = vsel %vm316_vm3, %v317_v60, %v315_v58 }
 0x142   :  { %v320_v59 = vmul.f32 %v1119_v57, %v311_v54 }
 0x144   :  { %v322_v62 = vsel %vm321_vm2, %v311_v54, %v320_v59 }
 0x145   :  { %v325_v15 = vsel %vm323_vm4, %v324_v61, %v322_v62 }
 0x146   :  { %v326_v43 = vpack.c.bf16 %v325_v15, %v318_v63 }
 0x148   :  { %971 = vmatmul.mubr.bf16.vlgmr.msra.gmra.mxu1 %v326_v43 }
 0x149   :  { %452 = vmatpush1.bf16.msra.mxu1 %v1275_v1  ;;  %483 = vmatprep.mubr.bf16.mxu1 %v1109_v33 }
 0x14a   :  { %453 = vmatprep.subr.bf16.mxu1 %v1278_v2 }
 0x14d   :  { %454 = vmatpush1.bf16.msra.mxu1 %v1281_v3 }
 0x14e   :  { %455 = vmatprep.subr.bf16.mxu1 %v1284_v4 }
 0x151   :  { %456 = vmatpush1.bf16.msra.mxu1 %v1287_v5 }
 0x152   :  { %457 = vmatprep.subr.bf16.mxu1 %v1290_v6 }
 0x155   :  { %458 = vmatpush1.bf16.msra.mxu1 %v1293_v7 }
 0x156   :  { %459 = vmatprep.subr.bf16.mxu1 %v1296_v8 }
 0x159   :  { %460 = vmatpush1.bf16.msra.mxu1 %v1299_v9 }
 0x15a   :  { %461 = vmatprep.subr.bf16.mxu1 %v1302_v10 }
 0x15d   :  { %462 = vmatpush1.bf16.msra.mxu1 %v1305_v11 }
 0x15e   :  { %463 = vmatprep.subr.bf16.mxu1 %v1308_v12 }
 0x161   :  { %464 = vmatpush1.bf16.msra.mxu1 %v1310_v13 }
 0x162   :  { %465 = vmatprep.subr.bf16.mxu1 %v1312_v14 }
 0x165   :  { %466 = vmatpush1.bf16.msra.mxu1 %v1316_v16 }
 0x166   :  { %467 = vmatprep.subr.bf16.mxu1 %v1318_v17 }
 0x169   :  { %468 = vmatpush2.bf16.msra.mxu1 %v1323_v18 }
 0x16a   :  { %469 = vmatprep.subr.bf16.mxu1 %v1326_v19 }
 0x16d   :  { %470 = vmatpush2.bf16.msra.mxu1 %v1329_v20 }
 0x16e   :  { %471 = vmatprep.subr.bf16.mxu1 %v1332_v21 }
 0x171   :  { %472 = vmatpush2.bf16.msra.mxu1 %v1335_v22 }
 0x172   :  { %473 = vmatprep.subr.bf16.mxu1 %v1338_v23 }
 0x175   :  { %474 = vmatpush2.bf16.msra.mxu1 %v1341_v24 }
 0x176   :  { %475 = vmatprep.subr.bf16.mxu1 %v1344_v25 }
 0x179   :  { %476 = vmatpush2.bf16.msra.mxu1 %v1347_v26 }
 0x17a   :  { %477 = vmatprep.subr.bf16.mxu1 %v1350_v27 }
 0x17d   :  { %478 = vmatpush2.bf16.msra.mxu1 %v1353_v28 }
 0x17e   :  { %479 = vmatprep.subr.bf16.mxu1 %v1356_v29 }
 0x181   :  { %480 = vmatpush2.bf16.msra.mxu1 %v1359_v30 }
 0x182   :  { %481 = vmatprep.subr.bf16.mxu1 %v1362_v31 }
 0x185   :  { %482 = vmatpush2.bf16.msra.mxu1 %v1365_v32 }
 0x186   :  { %994 = vmatprep.subr.bf16.mxu1 %v1241_v35 }
 0x188   :  { %484 = vmatmul.mubr.bf16.vlgmr.msra.gmra.mxu1 %v1107_v44 }
 0x189   :  { %995 = vmatpush3.bf16.msra.mxu1 %v1369_v34  ;;  %1010 = vmatprep.mubr.msk.bf16.mxu1 %vm1242_vm0, %v1241_v35 }
 0x18a   :  { %996 = vmatprep.subr.bf16.mxu1 %v1241_v35 }
 0x18d   :  { %997 = vmatpush3.bf16.msra.mxu1 %v1377_v36 }
 0x18e   :  { %998 = vmatprep.subr.bf16.mxu1 %v1241_v35 }
 0x191   :  { %999 = vmatpush3.bf16.msra.mxu1 %v1383_v37 }
 0x192   :  { %1000 = vmatprep.subr.bf16.mxu1 %v1241_v35 }
 0x195   :  { %1001 = vmatpush3.bf16.msra.mxu1 %v1389_v38 }
 0x196   :  { %1002 = vmatprep.subr.bf16.mxu1 %v1241_v35 }
 0x199   :  { %1003 = vmatpush3.bf16.msra.mxu1 %v1392_v39 }
 0x19a   :  { %1004 = vmatprep.subr.bf16.mxu1 %v1241_v35 }
 0x19d   :  { %1005 = vmatpush3.bf16.msra.mxu1 %v1402_v40 }
 0x19e   :  { %1006 = vmatprep.subr.bf16.mxu1 %v1241_v35 }
 0x1a1   :  { %1007 = vmatpush3.bf16.msra.mxu1 %v1408_v41 }
 0x1a2   :  { %1008 = vmatprep.subr.bf16.mxu1 %v1241_v35 }
 0x1a5   :  { %1009 = vmatpush3.bf16.msra.mxu1 %v1414_v42 }
 0x1a6   :  { %716 = vmatprep.subr.bf16.mxu1 %v1273_v0 }
 0x208   :  { %v1473_v45 = vpop.f32.mrf.mxu1 }
 0x20a   :  { %v972_v46 = vpop.f32.mrf.mxu1 }
 0x20c   :  { %v1475_v47 = vpop.f32.mrf.mxu1 }
 0x20e   :  { %v973_v48 = vpop.f32.mrf.mxu1 }
 0x248   :  { %v485_v49 = vpop.f32.mrf.mxu1 }
 0x249   :  { %v494_v51 = vmul.f32 %v485_v49, %v485_v49  ;;  %v1112_v49 = vld [vmem:[#allocation2 + $0x14] ss:$8 sps:$4 sm:$0xff]  }
 0x24a   :  { %v487_v50 = vpop.f32.mrf.mxu1 }
 0x24b   :  { %v496_v52 = vmul.f32 %v487_v50, %v487_v50 }
 0x24c   :  { %v489_v53 = vpop.f32.mrf.mxu1 }
 0x24d   :  { %v498_v54 = vadd.f32 %v496_v52, %v494_v51  ;;  %v495_v57 = vmul.f32 %v489_v53, %v489_v53  ;;  %v1110_v51 = vld [vmem:[#allocation2 + $0x10] ss:$8 sps:$4 sm:$0xff]  }
 0x24e   :  { %v491_v55 = vpop.f32.mrf.mxu1 }
 0x24f   :  { %v500_v56 = vadd.f32 1e-09, %v498_v54  ;;  %v497_v58 = vmul.f32 %v491_v55, %v491_v55 }
 0x251   :  { %1120 = vrsqrt.f32 %v500_v56  ;;  %v499_v59 = vadd.f32 %v497_v58, %v495_v57  ;;  %vm504_vm5 = vcmp.eq.f32.partialorder %v500_v56, inf  ;;  %v507_v33 = vand.u32 2147483648, %v500_v56 }
 0x252   :  { %vm506_vm7 = vcmp.eq.f32.partialorder %v500_v56, 0.0 }
 0x253   :  { %v501_v60 = vadd.f32 1e-09, %v499_v59 }
 0x255   :  { %1122 = vrsqrt.f32 %v501_v60  ;;  %vm511_vm6 = vcmp.eq.f32.partialorder %v501_v60, inf  ;;  %v514_v43 = vand.u32 2147483648, %v501_v60  ;;  %vm513_vm8 = vcmp.eq.f32.partialorder %v501_v60, 0.0 }
 0x25e   :  { %v1121_v0 = vpop.eup %1120 }
 0x25f   :  { %v503_v61 = vmul.f32 %v1121_v0, %v500_v56 }
 0x261   :  { %v505_v63 = vsel %vm504_vm5, %v500_v56, %v503_v61 }
 0x262   :  { %v1123_v62 = vpop.eup %1122  ;;  %v508_v46 = vsel %vm506_vm7, %v507_v33, %v505_v63 }
 0x263   :  { %v510_v15 = vmul.f32 %v1123_v62, %v501_v60 }
 0x265   :  { %v512_v44 = vsel %vm511_vm6, %v501_v60, %v510_v15 }
 0x266   :  { %v515_v48 = vsel %vm513_vm8, %v514_v43, %v512_v44 }
 0x267   :  { %v516_v50 = vpack.c.bf16 %v515_v48, %v508_v46 }
 0x269   :  { %991 = vmatmul.mubr.bf16.vlgmr.msra.gmra.mxu0 %v516_v50 }
 0x26a   :  { %592 = vmatpush1.bf16.msra.mxu0 %v1275_v1  ;;  %623 = vmatprep.mubr.bf16.mxu0 %v1112_v49 }
 0x26b   :  { %593 = vmatprep.subr.bf16.mxu0 %v1278_v2 }
 0x26e   :  { %594 = vmatpush1.bf16.msra.mxu0 %v1281_v3 }
 0x26f   :  { %595 = vmatprep.subr.bf16.mxu0 %v1284_v4 }
 0x272   :  { %596 = vmatpush1.bf16.msra.mxu0 %v1287_v5 }
 0x273   :  { %597 = vmatprep.subr.bf16.mxu0 %v1290_v6 }
 0x276   :  { %598 = vmatpush1.bf16.msra.mxu0 %v1293_v7 }
 0x277   :  { %599 = vmatprep.subr.bf16.mxu0 %v1296_v8 }
 0x27a   :  { %600 = vmatpush1.bf16.msra.mxu0 %v1299_v9 }
 0x27b   :  { %601 = vmatprep.subr.bf16.mxu0 %v1302_v10 }
 0x27e   :  { %602 = vmatpush1.bf16.msra.mxu0 %v1305_v11 }
 0x27f   :  { %603 = vmatprep.subr.bf16.mxu0 %v1308_v12 }
 0x282   :  { %604 = vmatpush1.bf16.msra.mxu0 %v1310_v13 }
 0x283   :  { %605 = vmatprep.subr.bf16.mxu0 %v1312_v14 }
 0x286   :  { %606 = vmatpush1.bf16.msra.mxu0 %v1316_v16 }
 0x287   :  { %607 = vmatprep.subr.bf16.mxu0 %v1318_v17 }
 0x28a   :  { %608 = vmatpush2.bf16.msra.mxu0 %v1323_v18 }
 0x28b   :  { %609 = vmatprep.subr.bf16.mxu0 %v1326_v19 }
 0x28e   :  { %610 = vmatpush2.bf16.msra.mxu0 %v1329_v20 }
 0x28f   :  { %611 = vmatprep.subr.bf16.mxu0 %v1332_v21 }
 0x292   :  { %612 = vmatpush2.bf16.msra.mxu0 %v1335_v22 }
 0x293   :  { %613 = vmatprep.subr.bf16.mxu0 %v1338_v23 }
 0x296   :  { %614 = vmatpush2.bf16.msra.mxu0 %v1341_v24 }
 0x297   :  { %615 = vmatprep.subr.bf16.mxu0 %v1344_v25 }
 0x29a   :  { %616 = vmatpush2.bf16.msra.mxu0 %v1347_v26 }
 0x29b   :  { %617 = vmatprep.subr.bf16.mxu0 %v1350_v27 }
 0x29e   :  { %618 = vmatpush2.bf16.msra.mxu0 %v1353_v28 }
 0x29f   :  { %619 = vmatprep.subr.bf16.mxu0 %v1356_v29 }
 0x2a2   :  { %620 = vmatpush2.bf16.msra.mxu0 %v1359_v30 }
 0x2a3   :  { %621 = vmatprep.subr.bf16.mxu0 %v1362_v31 }
 0x2a6   :  { %622 = vmatpush2.bf16.msra.mxu0 %v1365_v32 }
 0x2a7   :  { %1014 = vmatprep.subr.bf16.mxu0 %v1241_v35 }
 0x2a9   :  { %624 = vmatmul.mubr.bf16.vlgmr.msra.gmra.mxu0 %v1110_v51 }
 0x2aa   :  { %1015 = vmatpush3.bf16.msra.mxu0 %v1369_v34  ;;  %1030 = vmatprep.mubr.msk.bf16.mxu0 %vm1242_vm0, %v1241_v35  ;;  %v432_v34 = vmax.f32 %v1473_v45, 1e-05 }
 0x2ab   :  { %1016 = vmatprep.subr.bf16.mxu0 %v1241_v35 }
 0x2ac   :  { %1124 = vlog2.f32 %v432_v34 }
 0x2ae   :  { %1017 = vmatpush3.bf16.msra.mxu0 %v1377_v36 }
 0x2af   :  { %1018 = vmatprep.subr.bf16.mxu0 %v1241_v35 }
 0x2b2   :  { %1019 = vmatpush3.bf16.msra.mxu0 %v1383_v37  ;;  %v433_v37 = vmax.f32 %v1475_v47, 1e-05 }
 0x2b3   :  { %1020 = vmatprep.subr.bf16.mxu0 %v1241_v35 }
 0x2b6   :  { %1021 = vmatpush3.bf16.msra.mxu0 %v1389_v38 }
 0x2b7   :  { %1022 = vmatprep.subr.bf16.mxu0 %v1241_v35 }
 0x2b9   :  { %v1125_v54 = vpop.eup %1124 }
 0x2ba   :  { %1023 = vmatpush3.bf16.msra.mxu0 %v1392_v39  ;;  %v435_v56 = vmul.f32 0.6931472, %v1125_v54 }
 0x2bb   :  { %1024 = vmatprep.subr.bf16.mxu0 %v1241_v35 }
 0x2be   :  { %1025 = vmatpush3.bf16.msra.mxu0 %v1402_v40 }
 0x2bf   :  { %1026 = vmatprep.subr.bf16.mxu0 %v1241_v35 }
 0x2c2   :  { %1027 = vmatpush3.bf16.msra.mxu0 %v1408_v41 }
 0x2c3   :  { %1028 = vmatprep.subr.bf16.mxu0 %v1241_v35 }
 0x2c6   :  { %1029 = vmatpush3.bf16.msra.mxu0 %v1414_v42 }
 0x329   :  { %v551_v36 = vpop.f32.mrf.mxu0 }
 0x32a   :  { %v558_v38 = vmax.f32 %v551_v36, 1e-05 }
 0x32b   :  { %v992_v39 = vpop.f32.mrf.mxu0 }
 0x32c   :  { %1126 = vlog2.f32 %v558_v38 }
 0x32d   :  { %v554_v52 = vpop.f32.mrf.mxu0  ;;  %1128 = vlog2.f32 %v433_v37 }
 0x32e   :  { %v559_v40 = vmax.f32 %v554_v52, 1e-05 }
 0x32f   :  { %v993_v53 = vpop.f32.mrf.mxu0 }
 0x330   :  { %1130 = vlog2.f32 %v559_v40 }
 0x339   :  { %v1127_v41 = vpop.eup %1126 }
 0x33a   :  { %v561_v55 = vmul.f32 0.6931472, %v1127_v41  ;;  %v1129_v35 = vpop.eup %1128 }
 0x33b   :  { %v437_v57 = vmul.f32 0.6931472, %v1129_v35 }
 0x33c   :  { %v564_v58 = vsub.f32 %v561_v55, %v435_v56  ;;  %v1115_v55 = vld [vmem:[#allocation2 + $0x34] ss:$8 sps:$4 sm:$0xff]  }
 0x33d   :  { %v1131_v42 = vpop.eup %1130 }
 0x33e   :  { %v563_v45 = vmul.f32 0.6931472, %v1131_v42  ;;  %v566_v47 = vand.u32 2147483647, %v564_v58 }
 0x340   :  { %v565_v59 = vsub.f32 %v563_v45, %v437_v57 }
 0x342   :  { %v567_v60 = vand.u32 2147483647, %v565_v59 }
 0x344   :  { %v568_v0 = vadd.f32 %v567_v60, %v566_v47 }
 0x346   :  { %569 = vadd.xlane.f32.xlu0 %v568_v0 }
 0x369   :  { %v625_v61 = vpop.f32.mrf.mxu0 }
 0x36a   :  { %v634_v63 = vmul.f32 %v625_v61, %v625_v61 }
 0x36b   :  { %v627_v62 = vpop.f32.mrf.mxu0 }
 0x36c   :  { %v636_v15 = vmul.f32 %v627_v62, %v627_v62 }
 0x36d   :  { %v629_v33 = vpop.f32.mrf.mxu0 }
 0x36e   :  { %v638_v43 = vadd.f32 %v636_v15, %v634_v63  ;;  %v635_v48 = vmul.f32 %v629_v33, %v629_v33 }
 0x36f   :  { %v631_v44 = vpop.f32.mrf.mxu0 }
 0x370   :  { %v640_v46 = vadd.f32 1e-09, %v638_v43  ;;  %v637_v49 = vmul.f32 %v631_v44, %v631_v44 }
 0x372   :  { %1132 = vrsqrt.f32 %v640_v46  ;;  %v639_v50 = vadd.f32 %v637_v49, %v635_v48  ;;  %vm644_vm9 = vcmp.eq.f32.partialorder %v640_v46, inf  ;;  %v647_v52 = vand.u32 2147483648, %v640_v46 }
 0x373   :  { %vm646_vm11 = vcmp.eq.f32.partialorder %v640_v46, 0.0 }
 0x374   :  { %v641_v51 = vadd.f32 1e-09, %v639_v50 }
 0x376   :  { %1134 = vrsqrt.f32 %v641_v51  ;;  %vm651_vm10 = vcmp.eq.f32.partialorder %v641_v51, inf  ;;  %v654_v40 = vand.u32 2147483648, %v641_v51  ;;  %vm653_vm12 = vcmp.eq.f32.partialorder %v641_v51, 0.0 }
 0x37f   :  { %v1133_v34 = vpop.eup %1132 }
 0x380   :  { %v643_v36 = vmul.f32 %v1133_v34, %v640_v46 }
 0x382   :  { %v645_v38 = vsel %vm644_vm9, %v640_v46, %v643_v36 }
 0x383   :  { %v1135_v37 = vpop.eup %1134  ;;  %v648_v54 = vsel %vm646_vm11, %v647_v52, %v645_v38 }
 0x384   :  { %v650_v39 = vmul.f32 %v1135_v37, %v641_v51 }
 0x386   :  { %v652_v53 = vsel %vm651_vm10, %v641_v51, %v650_v39 }
 0x387   :  { %v655_v41 = vsel %vm653_vm12, %v654_v40, %v652_v53 }
 0x388   :  { %v656_v35 = vpack.c.bf16 %v655_v41, %v648_v54 }
 0x38a   :  { %1011 = vmatmul.mubr.bf16.vlgmr.msra.gmra.mxu1 %v656_v35  ;;  %v844_v35 = vlaneseq }
 0x38b   :  { %717 = vmatpush1.bf16.msra.mxu1 %v1275_v1  ;;  %748 = vmatprep.mubr.bf16.mxu1 %v1115_v55  ;;  %v1113_v1 = vld [vmem:[#allocation2 + $0x30] ss:$8 sps:$4 sm:$0xff]  }
 0x38c   :  { %718 = vmatprep.subr.bf16.mxu1 %v1278_v2 }
 0x38f   :  { %719 = vmatpush1.bf16.msra.mxu1 %v1281_v3 }
 0x390   :  { %720 = vmatprep.subr.bf16.mxu1 %v1284_v4 }
 0x393   :  { %721 = vmatpush1.bf16.msra.mxu1 %v1287_v5 }
 0x394   :  { %722 = vmatprep.subr.bf16.mxu1 %v1290_v6 }
 0x397   :  { %723 = vmatpush1.bf16.msra.mxu1 %v1293_v7 }
 0x398   :  { %724 = vmatprep.subr.bf16.mxu1 %v1296_v8 }
 0x39b   :  { %725 = vmatpush1.bf16.msra.mxu1 %v1299_v9 }
 0x39c   :  { %726 = vmatprep.subr.bf16.mxu1 %v1302_v10 }
 0x39f   :  { %727 = vmatpush1.bf16.msra.mxu1 %v1305_v11 }
 0x3a0   :  { %728 = vmatprep.subr.bf16.mxu1 %v1308_v12 }
 0x3a3   :  { %729 = vmatpush1.bf16.msra.mxu1 %v1310_v13 }
 0x3a4   :  { %730 = vmatprep.subr.bf16.mxu1 %v1312_v14 }
 0x3a7   :  { %731 = vmatpush1.bf16.msra.mxu1 %v1316_v16 }
 0x3a8   :  { %732 = vmatprep.subr.bf16.mxu1 %v1318_v17 }
 0x3ab   :  { %733 = vmatpush2.bf16.msra.mxu1 %v1323_v18 }
 0x3ac   :  { %734 = vmatprep.subr.bf16.mxu1 %v1326_v19 }
 0x3af   :  { %735 = vmatpush2.bf16.msra.mxu1 %v1329_v20 }
 0x3b0   :  { %736 = vmatprep.subr.bf16.mxu1 %v1332_v21 }
 0x3b3   :  { %737 = vmatpush2.bf16.msra.mxu1 %v1335_v22 }
 0x3b4   :  { %738 = vmatprep.subr.bf16.mxu1 %v1338_v23 }
 0x3b7   :  { %739 = vmatpush2.bf16.msra.mxu1 %v1341_v24 }
 0x3b8   :  { %740 = vmatprep.subr.bf16.mxu1 %v1344_v25 }
 0x3bb   :  { %741 = vmatpush2.bf16.msra.mxu1 %v1347_v26 }
 0x3bc   :  { %742 = vmatprep.subr.bf16.mxu1 %v1350_v27 }
 0x3bf   :  { %743 = vmatpush2.bf16.msra.mxu1 %v1353_v28 }
 0x3c0   :  { %744 = vmatprep.subr.bf16.mxu1 %v1356_v29 }
 0x3c3   :  { %745 = vmatpush2.bf16.msra.mxu1 %v1359_v30 }
 0x3c4   :  { %746 = vmatprep.subr.bf16.mxu1 %v1362_v31 }
 0x3c7   :  { %747 = vmatpush2.bf16.msra.mxu1 %v1365_v32 }
 0x3ca   :  { %749 = vmatmul.mubr.bf16.vlgmr.msra.gmra.mxu1 %v1113_v1  ;;  %v845_v1 = vshrl.u32 %v844_v35, 7 }
 0x3cc   :  { %vm848_vm1 = vcmp.eq.s32.totalorder %v845_v1, 0 }
 0x3cf   :  { %v570_v2 = vpop.xlane.xlu0 %569 }
 0x3d0   :  { %v571_v3 = vrot.slane %v570_v2, 4 }
 0x3d2   :  { %v572_v4 = vadd.f32 %v571_v3, %v570_v2  ;;  %v847_v2 = vand.u32 127, %v844_v35 }
 0x3d4   :  { %v573_v5 = vrot.slane %v572_v4, 2  ;;  %vm849_vm2 = vcmp.eq.s32.totalorder %v847_v2, 0 }
 0x3d5   :  { %vm850_vm3 = vmand %vm848_vm1, %vm849_vm2 }
 0x3d6   :  { %v574_v6 = vadd.f32 %v573_v5, %v572_v4 }
 0x3d8   :  { %v575_v7 = vrot.slane %v574_v6, 1 }
 0x3da   :  { %v576_v8 = vadd.f32 %v575_v7, %v574_v6 }
 0x3dc   :  { %1034 = vpush %v576_v8 }
 0x40d   :  { %s1035_s0 = spop %1034 }
 0x44a   :  { %v691_v9 = vpop.f32.mrf.mxu1 }
 0x44b   :  { %v698_v58 = vmax.f32 %v691_v9, 1e-05 }
 0x44c   :  { %v1012_v10 = vpop.f32.mrf.mxu1 }
 0x44e   :  { %v694_v11 = vpop.f32.mrf.mxu1 }
 0x44f   :  { %v699_v47 = vmax.f32 %v694_v11, 1e-05 }
 0x450   :  { %v1013_v12 = vpop.f32.mrf.mxu1 }
 0x48a   :  { %v750_v13 = vpop.f32.mrf.mxu1 }
 0x48b   :  { %v759_v16 = vmul.f32 %v750_v13, %v750_v13 }
 0x48c   :  { %v752_v14 = vpop.f32.mrf.mxu1 }
 0x48d   :  { %v761_v17 = vmul.f32 %v752_v14, %v752_v14 }
 0x48e   :  { %v754_v18 = vpop.f32.mrf.mxu1 }
 0x48f   :  { %v763_v19 = vadd.f32 %v761_v17, %v759_v16  ;;  %v760_v22 = vmul.f32 %v754_v18, %v754_v18 }
 0x490   :  { %v756_v20 = vpop.f32.mrf.mxu1 }
 0x491   :  { %v765_v21 = vadd.f32 1e-09, %v763_v19  ;;  %v762_v23 = vmul.f32 %v756_v20, %v756_v20 }
 0x493   :  { %1136 = vrsqrt.f32 %v765_v21  ;;  %v764_v24 = vadd.f32 %v762_v23, %v760_v22  ;;  %vm769_vm13 = vcmp.eq.f32.partialorder %v765_v21, inf  ;;  %v772_v31 = vand.u32 2147483648, %v765_v21 }
 0x494   :  { %vm771_vm15 = vcmp.eq.f32.partialorder %v765_v21, 0.0 }
 0x495   :  { %v766_v25 = vadd.f32 1e-09, %v764_v24 }
 0x497   :  { %1138 = vrsqrt.f32 %v766_v25  ;;  %vm776_vm14 = vcmp.eq.f32.partialorder %v766_v25, inf  ;;  %v779_v32 = vand.u32 2147483648, %v766_v25  ;;  %vm778_vm0 = vcmp.eq.f32.partialorder %v766_v25, 0.0 }
 0x498   :  { %1140 = vlog2.f32 %v698_v58 }
 0x4a0   :  { %v1137_v26 = vpop.eup %1136 }
 0x4a1   :  { %v768_v27 = vmul.f32 %v1137_v26, %v765_v21 }
 0x4a3   :  { %v770_v29 = vsel %vm769_vm13, %v765_v21, %v768_v27 }
 0x4a4   :  { %v1139_v28 = vpop.eup %1138  ;;  %v773_v42 = vsel %vm771_vm15, %v772_v31, %v770_v29 }
 0x4a5   :  { %v775_v30 = vmul.f32 %v1139_v28, %v766_v25  ;;  %v1141_v15 = vpop.eup %1140 }
 0x4a6   :  { %v701_v46 = vmul.f32 0.6931472, %v1141_v15 }
 0x4a7   :  { %v777_v56 = vsel %vm776_vm14, %v766_v25, %v775_v30 }
 0x4a8   :  { %v780_v57 = vsel %vm778_vm0, %v779_v32, %v777_v56 }
 0x4a9   :  { %v781_v45 = vpack.c.bf16 %v780_v57, %v773_v42 }
 0x4ab   :  { %1031 = vmatmul.mubr.bf16.vlgmr.msra.gmra.mxu0 %v781_v45 }
 0x56b   :  { %v816_v59 = vpop.f32.mrf.mxu0 }
 0x56c   :  { %v823_v60 = vmax.f32 %v816_v59, 1e-05 }
 0x56d   :  { %v1032_v0 = vpop.f32.mrf.mxu0 }
 0x56e   :  { %1142 = vlog2.f32 %v823_v60 }
 0x56f   :  { %v819_v61 = vpop.f32.mrf.mxu0  ;;  %1144 = vlog2.f32 %v699_v47 }
 0x570   :  { %v824_v62 = vmax.f32 %v819_v61, 1e-05 }
 0x571   :  { %v1033_v63 = vpop.f32.mrf.mxu0 }
 0x572   :  { %1146 = vlog2.f32 %v824_v62 }
 0x57b   :  { %v1143_v33 = vpop.eup %1142 }
 0x57c   :  { %v826_v43 = vmul.f32 0.6931472, %v1143_v33  ;;  %v1145_v44 = vpop.eup %1144 }
 0x57d   :  { %v703_v49 = vmul.f32 0.6931472, %v1145_v44 }
 0x57e   :  { %v829_v51 = vsub.f32 %v826_v43, %v701_v46 }
 0x57f   :  { %v1147_v48 = vpop.eup %1146 }
 0x580   :  { %v828_v50 = vmul.f32 0.6931472, %v1147_v48  ;;  %v831_v36 = vand.u32 2147483647, %v829_v51 }
 0x582   :  { %v830_v34 = vsub.f32 %v828_v50, %v703_v49 }
 0x584   :  { %v832_v37 = vand.u32 2147483647, %v830_v34 }
 0x586   :  { %v833_v38 = vadd.f32 %v832_v37, %v831_v36 }
 0x588   :  { %834 = vadd.xlane.f32.xlu0 %v833_v38 }
 0x611   :  { %v835_v39 = vpop.xlane.xlu0 %834 }
 0x612   :  { %v836_v52 = vrot.slane %v835_v39, 4 }
 0x614   :  { %v837_v40 = vadd.f32 %v836_v52, %v835_v39 }
 0x616   :  { %v838_v53 = vrot.slane %v837_v40, 2 }
 0x618   :  { %v839_v54 = vadd.f32 %v838_v53, %v837_v40 }
 0x61a   :  { %v840_v41 = vrot.slane %v839_v54, 1 }
 0x61c   :  { %v841_v55 = vadd.f32 %v840_v41, %v839_v54 }
 0x61e   :  { %1036 = vpush %v841_v55 }
 0x64f   :  { %s1037_s2 = spop %1036 }
 0x650   :  { %s843_s5 = sadd.f32 %s1037_s2, %s1035_s0 }
 0x652   :  { %v851_v3 = vstv %s843_s5 }
 0x653   :  { %v852_v4 = vsel %vm850_vm3, %v851_v3, 0.0 }
 0x654   :  { %853 = vst [vmem:[#allocation8] sm:$0xff] %v852_v4 }
 0x655   :  { %1219 = shalt.err (!%p1216_p5)
}
 0x656   :  { %863 = dma.vmem_to_hbm [thread:$0]  %s861_s4, 128, %s1565_s3, [#allocation4]  }
 0x657   :  { %1232 = dma.done.wait [#allocation4], 128  }
 0x658   :  { %1233 = vsyncadd [#allocation4], 4294967168 }
 0x659   :  { %867 = vsyncpa [#allocation3], 1 }
 0x65a   :  { %868 = vsyncpa [#allocation6], 1 }
 0x65b   :  { %869 = vsyncpa [#allocation4], 1 }

</bundles_post_ra>
